<compile_context>
chip_gen: v7x
topology: tpu7x:2x2x1
jax: 0.10.0
libtpu: 0.0.40
codegen_flags: <defaults>
</compile_context>

<pallas_src>
import math
import functools

import jax
import jax.numpy as jnp
from jax import lax
from jax.experimental import pallas as pl
from jax.experimental.pallas import tpu as pltpu

LANE = 128   # TPU lane width; all packed column blocks are padded to this


# ----------------------------------------------------------------------------
# Kernel: one batch element per grid step (megacore-parallel on v7x).
# ----------------------------------------------------------------------------

def tsc_block_kernel(x_ref, mask_ref, wqkv_ref, wod2_ref, vpack_ref, adjmix_ref,
                     o_ref, *, L, d, dff, h):
    # x_ref:      (L, d)                activations for this batch element
    # mask_ref:   (1, L, L)             attention mask (1 = keep, 0 = masked)
    # wqkv_ref:   (d, 3h*128 + dff)     [per-head padded Wq|Wk|Wv blocks | W1], bf16
    # wod2_ref:   (h*128 + dff, d)      [per-head padded Wo row blocks ; W2], bf16
    # vpack_ref:  (8, 3h*128 + dff)     row0 = padded [bq|bk|bv|b1]; rows1..6 =
    #                                   ln1a, ln1b, ln2a, ln2b, bo, b2 (lanes 0:d)
    # adjmix_ref: (L, L)                ((1-sig)/sig) * Gaussian adjacency
    f32, bf16 = jnp.float32, jnp.bfloat16
    ncol_qkv = 3 * h * LANE

    x = x_ref[...].astype(f32)                       # (L, d)
    Vv = vpack_ref[...]                              # (8, ncol_qkv + dff) f32
    adjmix = adjmix_ref[...]                         # (L, L) f32
    mb = mask_ref[0]                                 # (L, L)
    mzero = mb == 0.0                                # hoisted out of the head loop

    pbias = Vv[0:1, :]                               # (1, ncol_qkv + dff)
    ln1a, ln1b = Vv[1:2, 0:d], Vv[2:3, 0:d]
    ln2a, ln2b = Vv[3:4, 0:d], Vv[4:5, 0:d]
    bo,   b2   = Vv[5:6, 0:d], Vv[6:7, 0:d]

    inv_dm1 = 1.0 / (d - 1)                          # torch.std -> unbiased (n-1)

    def layernorm(y, a, b):
        mean = jnp.mean(y, axis=-1, keepdims=True)
        cen = y - mean
        std = jnp.sqrt(jnp.sum(cen * cen, axis=-1, keepdims=True) * inv_dm1)
        return a * cen / (std + 1e-6) + b            # exact divide (torch parity)

    Wqkv = wqkv_ref[...]                             # bf16 slab
    WoW2 = wod2_ref[...]                             # bf16 slab

    # ---------------- input sublayer: x + MHA(norm(x)) -----------------------
    y = layernorm(x, ln1a, ln1b)
    # Fused, lane-padded QKV projection (pad columns are exact zeros).
    qkv = jnp.dot(y.astype(bf16), Wqkv[:, :ncol_qkv],
                  preferred_element_type=f32) + pbias[:, :ncol_qkv]
    qkv16 = qkv.astype(bf16)                         # pad lanes stay exactly zero

    att = jnp.zeros((L, d), f32)
    for hh in range(h):                              # static unroll, h is tiny
        base = 3 * hh * LANE                         # all slices 128-lane aligned
        qh = qkv16[:, base:base + LANE]
        kh = qkv16[:, base + LANE:base + 2 * LANE]
        vh = qkv16[:, base + 2 * LANE:base + 3 * LANE]
        # UNSCALED scores (reference semantics); contract last dims -> no transpose.
        s = lax.dot_general(qh, kh, (((1,), (1,)), ((), ())),
                            preferred_element_type=f32)            # (L, L)
        s = jnp.where(mzero, -1e9, s)                               # masked_fill
        # softmax(s) / rowmax(softmax(s)) == exp(s - rowmax)  (exact identity)
        e = jnp.exp(s - jnp.max(s, axis=-1, keepdims=True))
        # row-normalize(sig*e + (1-sig)*adj) == row-normalize(e + ((1-sig)/sig)*adj)
        attn = e + adjmix
        attn = attn * pl.reciprocal(
            jnp.sum(attn, axis=-1, keepdims=True) + 1e-9, approx=True)
        head = jnp.dot(attn.astype(bf16), vh, preferred_element_type=f32)  # (L,128)
        # Fold Wo into the loop (no lane-dim concat of head outputs); sublane slice.
        att = att + jnp.dot(head.astype(bf16),
                            WoW2[hh * LANE:(hh + 1) * LANE, :],
                            preferred_element_type=f32)
    x1 = x + att + bo

    # ---------------- output sublayer: x1 + FFN(norm(x1)) --------------------
    y2 = layernorm(x1, ln2a, ln2b)
    hdn = jnp.dot(y2.astype(bf16), Wqkv[:, ncol_qkv:],
                  preferred_element_type=f32) + pbias[:, ncol_qkv:]
    g = 0.5 * hdn * (1.0 + jnp.tanh(math.sqrt(2.0 / math.pi)
                                    * (hdn + 0.044715 * hdn * hdn * hdn)))
    ff = jnp.dot(g.astype(bf16), WoW2[h * LANE:, :],
                 preferred_element_type=f32) + b2
    o_ref[...] = (x1 + ff).astype(o_ref.dtype)


# ----------------------------------------------------------------------------
# Wrapper
# ----------------------------------------------------------------------------

def tsc_transformer_block(x, mask, packed, *, heads):
    # x: (B, L, d), mask: (B, L, L) -> (B, L, d)
    B, L, d = x.shape
    dff = packed['dff']
    width = 3 * heads * LANE + dff
    x2 = x.reshape(B * L, d)                         # batch folded into rows

    kern = functools.partial(tsc_block_kernel, L=L, d=d, dff=dff, h=heads)
    out = pl.pallas_call(
        kern,
        grid=(B,),
        in_specs=[
            pl.BlockSpec((L, d), lambda b: (b, 0)),                    # x rows of batch b
            pl.BlockSpec((1, L, L), lambda b: (b, 0, 0)),              # mask
            pl.BlockSpec((d, width), lambda b: (0, 0)),                # QKV|W1 slab (bf16)
            pl.BlockSpec((heads * LANE + dff, d), lambda b: (0, 0)),   # Wo|W2 slab (bf16)
            pl.BlockSpec((8, width), lambda b: (0, 0)),                # bias/LN vectors
            pl.BlockSpec((L, L), lambda b: (0, 0)),                    # scaled adjacency
        ],
        out_specs=pl.BlockSpec((L, d), lambda b: (b, 0)),
        out_shape=jax.ShapeDtypeStruct((B * L, d), jnp.float32),
        compiler_params=pltpu.CompilerParams(dimension_semantics=("parallel",)),
        cost_estimate=pl.CostEstimate(flops=3_200_000, transcendentals=5_200,
                                      bytes_accessed=125_000),
    )(x2, mask, packed['wqkv'], packed['wod2'], packed['vpack'], packed['adjmix'])
    return out.reshape(B, L, d)


# ----------------------------------------------------------------------------
# Parameters (deterministic, synthetic) + 128-lane-aligned packing
# ----------------------------------------------------------------------------

def init_params(key, d, L, dff):
    ks = iter(jax.random.split(key, 16))

    def nrm(shape, scale=0.1):
        return scale * jax.random.normal(next(ks), shape, jnp.float32)

    t = jnp.arange(L, dtype=jnp.float32)
    diff = t[:, None] - t[None, :]
    adj = jnp.exp(-(diff ** 2) / 2.0)                # LrEnb=0, pow=2 adjacency

    return {
        'ln1a': jnp.ones((d,), jnp.float32), 'ln1b': jnp.zeros((d,), jnp.float32),
        'wq': nrm((d, d)), 'bq': nrm((d,), 0.01),
        'wk': nrm((d, d)), 'bk': nrm((d,), 0.01),
        'wv': nrm((d, d)), 'bv': nrm((d,), 0.01),
        'wo': nrm((d, d)), 'bo': nrm((d,), 0.01),
        'ln2a': jnp.ones((d,), jnp.float32), 'ln2b': jnp.zeros((d,), jnp.float32),
        'w1': nrm((d, dff)), 'b1': nrm((dff,), 0.01),
        'w2': nrm((dff, d)), 'b2': nrm((d,), 0.01),
        'lam1': jnp.zeros((), jnp.float32),          # reference init: lam1 = 0
        'adj': adj,
    }


def pack_params(p, heads):
    """One-time parameter preprocessing: 128-lane-aligned, zero-padded slabs."""
    d = p['wq'].shape[0]
    dff = p['w1'].shape[1]
    dk = d // heads
    assert d % heads == 0 and dk <= LANE and dff % LANE == 0

    # [per-head padded Wq|Wk|Wv column blocks | W1]  and matching bias row.
    wcols, bcols = [], []
    for hh in range(heads):
        for wname, bname in (('wq', 'bq'), ('wk', 'bk'), ('wv', 'bv')):
            wblk = jnp.zeros((d, LANE), jnp.float32).at[:, :dk].set(
                p[wname][:, hh * dk:(hh + 1) * dk])
            bblk = jnp.zeros((LANE,), jnp.float32).at[:dk].set(
                p[bname][hh * dk:(hh + 1) * dk])
            wcols.append(wblk)
            bcols.append(bblk)
    wqkv = jnp.concatenate(wcols + [p['w1']], axis=1)       # (d, 3h*128 + dff)
    pbias = jnp.concatenate(bcols + [p['b1']], axis=0)      # (3h*128 + dff,)

    # [per-head padded Wo row blocks ; W2] — sliced on sublanes in-kernel.
    worows = []
    for hh in range(heads):
        blk = jnp.zeros((LANE, d), jnp.float32).at[:dk, :].set(
            p['wo'][hh * dk:(hh + 1) * dk, :])
        worows.append(blk)
    wod2 = jnp.concatenate(worows + [p['w2']], axis=0)      # (h*128 + dff, d)

    width = 3 * heads * LANE + dff
    vpack = jnp.zeros((8, width), jnp.float32)
    vpack = vpack.at[0, :].set(pbias)
    for i, name in enumerate(('ln1a', 'ln1b', 'ln2a', 'ln2b', 'bo', 'b2')):
        vpack = vpack.at[1 + i, :d].set(p[name])

    # Fold sigmoid(lam1) into the adjacency (sigmoid > 0 always):
    #   normalize(sig*attn + (1-sig)*adj) == normalize(attn + ((1-sig)/sig)*adj)
    sig = jax.nn.sigmoid(p['lam1'])
    adjmix = ((1.0 - sig) / sig) * p['adj']

    return {'wqkv': wqkv.astype(jnp.bfloat16),               # MXU-native operands
            'wod2': wod2.astype(jnp.bfloat16),
            'vpack': vpack,
            'adjmix': adjmix.astype(jnp.float32),
            'dff': dff}


# ----------------------------------------------------------------------------
# Pure-JAX reference (mirrors the PyTorch eval-mode forward, unsimplified math)
# ----------------------------------------------------------------------------

def tsc_block_reference(x, mask, p, *, heads):
    B, L, d = x.shape
    dk = d // heads

    def layernorm(y, a, b):
        mean = y.mean(-1, keepdims=True)
        std = jnp.sqrt(((y - mean) ** 2).sum(-1, keepdims=True) / (d - 1))
        return a * (y - mean) / (std + 1e-6) + b

    y = layernorm(x, p['ln1a'], p['ln1b'])
    q = y @ p['wq'] + p['bq']
    k = y @ p['wk'] + p['bk']
    v = y @ p['wv'] + p['bv']

    def split(t):
        return t.reshape(B, L, heads, dk).transpose(0, 2, 1, 3)

    qh, kh, vh = split(q), split(k), split(v)
    s = jnp.einsum('bhqe,bhke->bhqk', qh, kh)                 # unscaled
    s = jnp.where(mask[:, None, :, :] == 0, -1e9, s)
    pa = jax.nn.softmax(s, axis=-1)
    attn = pa / jnp.max(pa, axis=-1, keepdims=True)
    sig = jax.nn.sigmoid(p['lam1'])
    attn = sig * attn + (1.0 - sig) * p['adj'][None, None]
    attn = attn / (attn.sum(-1, keepdims=True) + 1e-9)
    oh = jnp.einsum('bhqk,bhke->bhqe', attn, vh)
    o = oh.transpose(0, 2, 1, 3).reshape(B, L, d)
    o = o @ p['wo'] + p['bo']
    x1 = x + o

    y2 = layernorm(x1, p['ln2a'], p['ln2b'])
    hdd = y2 @ p['w1'] + p['b1']
    g = 0.5 * hdd * (1.0 + jnp.tanh(math.sqrt(2.0 / math.pi)
                                    * (hdd + 0.044715 * hdd ** 3)))
    return x1 + g @ p['w2'] + p['b2']


# ----------------------------------------------------------------------------
# Main
# ----------------------------------------------------------------------------

if __name__ == "__main__":
    # TSCTransformerBlock(hidden=32, attn_heads=2, feed_forward_hidden=128,
    #                     dropout, Max_Len=16, pow=2, LrEnb=0, LrMo=0), batch=2.
    B, L, d = 2, 16, 32
    heads = 2
    dff = 4 * d

    key = jax.random.PRNGKey(0)
    kp, kx = jax.random.split(key)

    raw = init_params(kp, d, L, dff)
    packed = pack_params(raw, heads)

    x = jax.random.normal(kx, (B, L, d), jnp.float32)
    mask = jnp.ones((B, L, L), jnp.float32)          # eval: all-visible -> no-op fill

    out = tsc_transformer_block(x, mask, packed, heads=heads)
    jax.block_until_ready(out)

    assert out.shape == (B, L, d), out.shape
    assert bool(jnp.all(jnp.isfinite(out)))

    ref = tsc_block_reference(x, mask, raw, heads=heads)
    err = float(jnp.max(jnp.abs(out - ref)))
    # Tolerance covers bf16 matmul operands (per perf review) + approx reciprocal
    # in the attention row-sum; observed error is ~1e-2 absolute worst case.
    assert err < 5e-2, f"max abs error vs reference: {err}"

    print("KERNEL_OK")
</pallas_src>

<mosaic_0001>
module attributes {stable_mosaic.version = 11 : i64} {
  func.func @tsc_block_kernel(%arg0: i32, %arg1: memref<16x32xf32, #tpu.memory_space<vmem>>, %arg2: memref<1x16x16xf32, #tpu.memory_space<vmem>>, %arg3: memref<32x896xbf16, #tpu.memory_space<vmem>>, %arg4: memref<384x32xbf16, #tpu.memory_space<vmem>>, %arg5: memref<8x896xf32, #tpu.memory_space<vmem>>, %arg6: memref<16x16xf32, #tpu.memory_space<vmem>>, %arg7: memref<16x32xf32, #tpu.memory_space<vmem>>) attributes {dimension_semantics = [#tpu.dimension_semantics<parallel>], iteration_bounds = array<i64: 2>, scalar_prefetch = 0 : i64, scratch_operands = 0 : i64, tpu.core_type = #tpu.core_type<tc>, window_params = [{transform_indices = @transform_0, window_bounds = array<i64: 16, 32>}, {transform_indices = @transform_1, window_bounds = array<i64: 1, 16, 16>}, {pipeline_mode = #tpu.pipeline_mode<synchronous>, transform_indices = @transform_2, window_bounds = array<i64: 32, 896>}, {pipeline_mode = #tpu.pipeline_mode<synchronous>, transform_indices = @transform_3, window_bounds = array<i64: 384, 32>}, {pipeline_mode = #tpu.pipeline_mode<synchronous>, transform_indices = @transform_4, window_bounds = array<i64: 8, 896>}, {pipeline_mode = #tpu.pipeline_mode<synchronous>, transform_indices = @transform_5, window_bounds = array<i64: 16, 16>}, {transform_indices = @transform_6, window_bounds = array<i64: 16, 32>}]} {
    %c0 = arith.constant 0 : index
    %c0_0 = arith.constant 0 : index
    %0 = vector.load %arg1[%c0, %c0_0] : memref<16x32xf32, #tpu.memory_space<vmem>>, vector<16x32xf32>
    %c0_1 = arith.constant 0 : index
    %c0_2 = arith.constant 0 : index
    %1 = vector.load %arg5[%c0_1, %c0_2] : memref<8x896xf32, #tpu.memory_space<vmem>>, vector<8x896xf32>
    %c0_3 = arith.constant 0 : index
    %c0_4 = arith.constant 0 : index
    %2 = vector.load %arg6[%c0_3, %c0_4] : memref<16x16xf32, #tpu.memory_space<vmem>>, vector<16x16xf32>
    %c0_5 = arith.constant 0 : index
    %c0_6 = arith.constant 0 : index
    %c0_7 = arith.constant 0 : index
    %3 = vector.load %arg2[%c0_5, %c0_6, %c0_7] : memref<1x16x16xf32, #tpu.memory_space<vmem>>, vector<1x16x16xf32>
    %4 = vector.shape_cast %3 : vector<1x16x16xf32> to vector<16x16xf32>
    %cst = arith.constant 0.000000e+00 : f32
    %5 = vector.broadcast %cst : f32 to vector<16x16xf32>
    %6 = arith.cmpf oeq, %4, %5 : vector<16x16xf32>
    %7 = vector.extract_strided_slice %1 {offsets = [0, 0], sizes = [1, 896], strides = [1, 1]} : vector<8x896xf32> to vector<1x896xf32>
    %8 = vector.extract_strided_slice %1 {offsets = [1, 0], sizes = [1, 32], strides = [1, 1]} : vector<8x896xf32> to vector<1x32xf32>
    %9 = vector.extract_strided_slice %1 {offsets = [2, 0], sizes = [1, 32], strides = [1, 1]} : vector<8x896xf32> to vector<1x32xf32>
    %10 = vector.extract_strided_slice %1 {offsets = [3, 0], sizes = [1, 32], strides = [1, 1]} : vector<8x896xf32> to vector<1x32xf32>
    %11 = vector.extract_strided_slice %1 {offsets = [4, 0], sizes = [1, 32], strides = [1, 1]} : vector<8x896xf32> to vector<1x32xf32>
    %12 = vector.extract_strided_slice %1 {offsets = [5, 0], sizes = [1, 32], strides = [1, 1]} : vector<8x896xf32> to vector<1x32xf32>
    %13 = vector.extract_strided_slice %1 {offsets = [6, 0], sizes = [1, 32], strides = [1, 1]} : vector<8x896xf32> to vector<1x32xf32>
    %c0_8 = arith.constant 0 : index
    %c0_9 = arith.constant 0 : index
    %14 = vector.load %arg3[%c0_8, %c0_9] : memref<32x896xbf16, #tpu.memory_space<vmem>>, vector<32x896xbf16>
    %c0_10 = arith.constant 0 : index
    %c0_11 = arith.constant 0 : index
    %15 = vector.load %arg4[%c0_10, %c0_11] : memref<384x32xbf16, #tpu.memory_space<vmem>>, vector<384x32xbf16>
    %cst_12 = arith.constant dense<0.000000e+00> : vector<16xf32>
    %16 = vector.multi_reduction <add>, %0, %cst_12 [1] : vector<16x32xf32> to vector<16xf32>
    %17 = vector.shape_cast %16 : vector<16xf32> to vector<16x1xf32>
    %cst_13 = arith.constant 3.200000e+01 : f32
    %18 = vector.broadcast %cst_13 : f32 to vector<16x1xf32>
    %19 = arith.divf %17, %18 : vector<16x1xf32>
    %20 = vector.broadcast %19 : vector<16x1xf32> to vector<16x32xf32>
    %21 = arith.subf %0, %20 : vector<16x32xf32>
    %22 = arith.mulf %21, %21 : vector<16x32xf32>
    %cst_14 = arith.constant dense<0.000000e+00> : vector<16xf32>
    %23 = vector.multi_reduction <add>, %22, %cst_14 [1] : vector<16x32xf32> to vector<16xf32>
    %24 = vector.shape_cast %23 : vector<16xf32> to vector<16x1xf32>
    %cst_15 = arith.constant 0.0322580636 : f32
    %25 = vector.broadcast %cst_15 : f32 to vector<16x1xf32>
    %26 = arith.mulf %24, %25 : vector<16x1xf32>
    %27 = math.sqrt %26 : vector<16x1xf32>
    %28 = vector.broadcast %8 : vector<1x32xf32> to vector<16x32xf32>
    %29 = arith.mulf %28, %21 : vector<16x32xf32>
    %cst_16 = arith.constant 9.99999997E-7 : f32
    %30 = vector.broadcast %cst_16 : f32 to vector<16x1xf32>
    %31 = arith.addf %27, %30 : vector<16x1xf32>
    %32 = vector.broadcast %31 : vector<16x1xf32> to vector<16x32xf32>
    %33 = arith.divf %29, %32 : vector<16x32xf32>
    %34 = vector.broadcast %9 : vector<1x32xf32> to vector<16x32xf32>
    %35 = arith.addf %33, %34 : vector<16x32xf32>
    %36 = arith.truncf %35 : vector<16x32xf32> to vector<16x32xbf16>
    %37 = vector.extract_strided_slice %14 {offsets = [0, 0], sizes = [32, 768], strides = [1, 1]} : vector<32x896xbf16> to vector<32x768xbf16>
    %cst_17 = arith.constant dense<0.000000e+00> : vector<16x768xf32>
    %38 = tpu.matmul %36, %37, %cst_17 {dimension_numbers = #tpu.dot_dimension_numbers<[1], [0], [0], [1], [0, 0, 1, 1], [], []>} : vector<16x32xbf16>, vector<32x768xbf16>, vector<16x768xf32> -> vector<16x768xf32>
    %39 = vector.extract_strided_slice %7 {offsets = [0, 0], sizes = [1, 768], strides = [1, 1]} : vector<1x896xf32> to vector<1x768xf32>
    %40 = vector.broadcast %39 : vector<1x768xf32> to vector<16x768xf32>
    %41 = arith.addf %38, %40 : vector<16x768xf32>
    %42 = arith.truncf %41 : vector<16x768xf32> to vector<16x768xbf16>
    %cst_18 = arith.constant 0.000000e+00 : f32
    %43 = vector.broadcast %cst_18 : f32 to vector<16x32xf32>
    %44 = vector.extract_strided_slice %42 {offsets = [0, 0], sizes = [16, 128], strides = [1, 1]} : vector<16x768xbf16> to vector<16x128xbf16>
    %45 = vector.extract_strided_slice %42 {offsets = [0, 128], sizes = [16, 128], strides = [1, 1]} : vector<16x768xbf16> to vector<16x128xbf16>
    %46 = vector.extract_strided_slice %42 {offsets = [0, 256], sizes = [16, 128], strides = [1, 1]} : vector<16x768xbf16> to vector<16x128xbf16>
    %cst_19 = arith.constant dense<0.000000e+00> : vector<16x16xf32>
    %47 = tpu.matmul %44, %45, %cst_19 {dimension_numbers = #tpu.dot_dimension_numbers<[1], [1], [0], [0], [0, 0, 1, 0], [], []>} : vector<16x128xbf16>, vector<16x128xbf16>, vector<16x16xf32> -> vector<16x16xf32>
    %cst_20 = arith.constant -1.000000e+09 : f32
    %48 = vector.broadcast %cst_20 : f32 to vector<16x16xf32>
    %49 = arith.select %6, %48, %47 : vector<16x16xi1>, vector<16x16xf32>
    %cst_21 = arith.constant dense<0xFF800000> : vector<16xf32>
    %50 = vector.multi_reduction <maximumf>, %49, %cst_21 [1] : vector<16x16xf32> to vector<16xf32>
    %51 = vector.shape_cast %50 : vector<16xf32> to vector<16x1xf32>
    %52 = vector.broadcast %51 : vector<16x1xf32> to vector<16x16xf32>
    %53 = arith.subf %49, %52 : vector<16x16xf32>
    %54 = math.exp %53 : vector<16x16xf32>
    %55 = arith.addf %54, %2 : vector<16x16xf32>
    %cst_22 = arith.constant dense<0.000000e+00> : vector<16xf32>
    %56 = vector.multi_reduction <add>, %55, %cst_22 [1] : vector<16x16xf32> to vector<16xf32>
    %57 = vector.shape_cast %56 : vector<16xf32> to vector<16x1xf32>
    %cst_23 = arith.constant 9.99999971E-10 : f32
    %58 = vector.broadcast %cst_23 : f32 to vector<16x1xf32>
    %59 = arith.addf %57, %58 : vector<16x1xf32>
    %60 = tpu.reciprocal %59 {approx = true} : vector<16x1xf32> -> vector<16x1xf32>
    %61 = vector.broadcast %60 : vector<16x1xf32> to vector<16x16xf32>
    %62 = arith.mulf %55, %61 : vector<16x16xf32>
    %63 = arith.truncf %62 : vector<16x16xf32> to vector<16x16xbf16>
    %cst_24 = arith.constant dense<0.000000e+00> : vector<16x128xf32>
    %64 = tpu.matmul %63, %46, %cst_24 {dimension_numbers = #tpu.dot_dimension_numbers<[1], [0], [0], [1], [0, 0, 1, 1], [], []>} : vector<16x16xbf16>, vector<16x128xbf16>, vector<16x128xf32> -> vector<16x128xf32>
    %65 = arith.truncf %64 : vector<16x128xf32> to vector<16x128xbf16>
    %66 = vector.extract_strided_slice %15 {offsets = [0, 0], sizes = [128, 32], strides = [1, 1]} : vector<384x32xbf16> to vector<128x32xbf16>
    %cst_25 = arith.constant dense<0.000000e+00> : vector<16x32xf32>
    %67 = tpu.matmul %65, %66, %cst_25 {dimension_numbers = #tpu.dot_dimension_numbers<[1], [0], [0], [1], [0, 0, 1, 1], [], []>} : vector<16x128xbf16>, vector<128x32xbf16>, vector<16x32xf32> -> vector<16x32xf32>
    %68 = arith.addf %43, %67 : vector<16x32xf32>
    %69 = vector.extract_strided_slice %42 {offsets = [0, 384], sizes = [16, 128], strides = [1, 1]} : vector<16x768xbf16> to vector<16x128xbf16>
    %70 = vector.extract_strided_slice %42 {offsets = [0, 512], sizes = [16, 128], strides = [1, 1]} : vector<16x768xbf16> to vector<16x128xbf16>
    %71 = vector.extract_strided_slice %42 {offsets = [0, 640], sizes = [16, 128], strides = [1, 1]} : vector<16x768xbf16> to vector<16x128xbf16>
    %cst_26 = arith.constant dense<0.000000e+00> : vector<16x16xf32>
    %72 = tpu.matmul %69, %70, %cst_26 {dimension_numbers = #tpu.dot_dimension_numbers<[1], [1], [0], [0], [0, 0, 1, 0], [], []>} : vector<16x128xbf16>, vector<16x128xbf16>, vector<16x16xf32> -> vector<16x16xf32>
    %cst_27 = arith.constant -1.000000e+09 : f32
    %73 = vector.broadcast %cst_27 : f32 to vector<16x16xf32>
    %74 = arith.select %6, %73, %72 : vector<16x16xi1>, vector<16x16xf32>
    %cst_28 = arith.constant dense<0xFF800000> : vector<16xf32>
    %75 = vector.multi_reduction <maximumf>, %74, %cst_28 [1] : vector<16x16xf32> to vector<16xf32>
    %76 = vector.shape_cast %75 : vector<16xf32> to vector<16x1xf32>
    %77 = vector.broadcast %76 : vector<16x1xf32> to vector<16x16xf32>
    %78 = arith.subf %74, %77 : vector<16x16xf32>
    %79 = math.exp %78 : vector<16x16xf32>
    %80 = arith.addf %79, %2 : vector<16x16xf32>
    %cst_29 = arith.constant dense<0.000000e+00> : vector<16xf32>
    %81 = vector.multi_reduction <add>, %80, %cst_29 [1] : vector<16x16xf32> to vector<16xf32>
    %82 = vector.shape_cast %81 : vector<16xf32> to vector<16x1xf32>
    %cst_30 = arith.constant 9.99999971E-10 : f32
    %83 = vector.broadcast %cst_30 : f32 to vector<16x1xf32>
    %84 = arith.addf %82, %83 : vector<16x1xf32>
    %85 = tpu.reciprocal %84 {approx = true} : vector<16x1xf32> -> vector<16x1xf32>
    %86 = vector.broadcast %85 : vector<16x1xf32> to vector<16x16xf32>
    %87 = arith.mulf %80, %86 : vector<16x16xf32>
    %88 = arith.truncf %87 : vector<16x16xf32> to vector<16x16xbf16>
    %cst_31 = arith.constant dense<0.000000e+00> : vector<16x128xf32>
    %89 = tpu.matmul %88, %71, %cst_31 {dimension_numbers = #tpu.dot_dimension_numbers<[1], [0], [0], [1], [0, 0, 1, 1], [], []>} : vector<16x16xbf16>, vector<16x128xbf16>, vector<16x128xf32> -> vector<16x128xf32>
    %90 = arith.truncf %89 : vector<16x128xf32> to vector<16x128xbf16>
    %91 = vector.extract_strided_slice %15 {offsets = [128, 0], sizes = [128, 32], strides = [1, 1]} : vector<384x32xbf16> to vector<128x32xbf16>
    %cst_32 = arith.constant dense<0.000000e+00> : vector<16x32xf32>
    %92 = tpu.matmul %90, %91, %cst_32 {dimension_numbers = #tpu.dot_dimension_numbers<[1], [0], [0], [1], [0, 0, 1, 1], [], []>} : vector<16x128xbf16>, vector<128x32xbf16>, vector<16x32xf32> -> vector<16x32xf32>
    %93 = arith.addf %68, %92 : vector<16x32xf32>
    %94 = arith.addf %0, %93 : vector<16x32xf32>
    %95 = vector.broadcast %12 : vector<1x32xf32> to vector<16x32xf32>
    %96 = arith.addf %94, %95 : vector<16x32xf32>
    %cst_33 = arith.constant dense<0.000000e+00> : vector<16xf32>
    %97 = vector.multi_reduction <add>, %96, %cst_33 [1] : vector<16x32xf32> to vector<16xf32>
    %98 = vector.shape_cast %97 : vector<16xf32> to vector<16x1xf32>
    %cst_34 = arith.constant 3.200000e+01 : f32
    %99 = vector.broadcast %cst_34 : f32 to vector<16x1xf32>
    %100 = arith.divf %98, %99 : vector<16x1xf32>
    %101 = vector.broadcast %100 : vector<16x1xf32> to vector<16x32xf32>
    %102 = arith.subf %96, %101 : vector<16x32xf32>
    %103 = arith.mulf %102, %102 : vector<16x32xf32>
    %cst_35 = arith.constant dense<0.000000e+00> : vector<16xf32>
    %104 = vector.multi_reduction <add>, %103, %cst_35 [1] : vector<16x32xf32> to vector<16xf32>
    %105 = vector.shape_cast %104 : vector<16xf32> to vector<16x1xf32>
    %cst_36 = arith.constant 0.0322580636 : f32
    %106 = vector.broadcast %cst_36 : f32 to vector<16x1xf32>
    %107 = arith.mulf %105, %106 : vector<16x1xf32>
    %108 = math.sqrt %107 : vector<16x1xf32>
    %109 = vector.broadcast %10 : vector<1x32xf32> to vector<16x32xf32>
    %110 = arith.mulf %109, %102 : vector<16x32xf32>
    %cst_37 = arith.constant 9.99999997E-7 : f32
    %111 = vector.broadcast %cst_37 : f32 to vector<16x1xf32>
    %112 = arith.addf %108, %111 : vector<16x1xf32>
    %113 = vector.broadcast %112 : vector<16x1xf32> to vector<16x32xf32>
    %114 = arith.divf %110, %113 : vector<16x32xf32>
    %115 = vector.broadcast %11 : vector<1x32xf32> to vector<16x32xf32>
    %116 = arith.addf %114, %115 : vector<16x32xf32>
    %117 = arith.truncf %116 : vector<16x32xf32> to vector<16x32xbf16>
    %118 = vector.extract_strided_slice %14 {offsets = [0, 768], sizes = [32, 128], strides = [1, 1]} : vector<32x896xbf16> to vector<32x128xbf16>
    %cst_38 = arith.constant dense<0.000000e+00> : vector<16x128xf32>
    %119 = tpu.matmul %117, %118, %cst_38 {dimension_numbers = #tpu.dot_dimension_numbers<[1], [0], [0], [1], [0, 0, 1, 1], [], []>} : vector<16x32xbf16>, vector<32x128xbf16>, vector<16x128xf32> -> vector<16x128xf32>
    %120 = vector.extract_strided_slice %7 {offsets = [0, 768], sizes = [1, 128], strides = [1, 1]} : vector<1x896xf32> to vector<1x128xf32>
    %121 = vector.broadcast %120 : vector<1x128xf32> to vector<16x128xf32>
    %122 = arith.addf %119, %121 : vector<16x128xf32>
    %cst_39 = arith.constant 5.000000e-01 : f32
    %123 = vector.broadcast %cst_39 : f32 to vector<16x128xf32>
    %124 = arith.mulf %123, %122 : vector<16x128xf32>
    %cst_40 = arith.constant 4.471500e-02 : f32
    %125 = vector.broadcast %cst_40 : f32 to vector<16x128xf32>
    %126 = arith.mulf %125, %122 : vector<16x128xf32>
    %127 = arith.mulf %126, %122 : vector<16x128xf32>
    %128 = arith.mulf %127, %122 : vector<16x128xf32>
    %129 = arith.addf %122, %128 : vector<16x128xf32>
    %cst_41 = arith.constant 0.797884583 : f32
    %130 = vector.broadcast %cst_41 : f32 to vector<16x128xf32>
    %131 = arith.mulf %130, %129 : vector<16x128xf32>
    %132 = math.tanh %131 : vector<16x128xf32>
    %cst_42 = arith.constant 1.000000e+00 : f32
    %133 = vector.broadcast %cst_42 : f32 to vector<16x128xf32>
    %134 = arith.addf %133, %132 : vector<16x128xf32>
    %135 = arith.mulf %124, %134 : vector<16x128xf32>
    %136 = arith.truncf %135 : vector<16x128xf32> to vector<16x128xbf16>
    %137 = vector.extract_strided_slice %15 {offsets = [256, 0], sizes = [128, 32], strides = [1, 1]} : vector<384x32xbf16> to vector<128x32xbf16>
    %cst_43 = arith.constant dense<0.000000e+00> : vector<16x32xf32>
    %138 = tpu.matmul %136, %137, %cst_43 {dimension_numbers = #tpu.dot_dimension_numbers<[1], [0], [0], [1], [0, 0, 1, 1], [], []>} : vector<16x128xbf16>, vector<128x32xbf16>, vector<16x32xf32> -> vector<16x32xf32>
    %139 = vector.broadcast %13 : vector<1x32xf32> to vector<16x32xf32>
    %140 = arith.addf %138, %139 : vector<16x32xf32>
    %141 = arith.addf %96, %140 : vector<16x32xf32>
    %c0_44 = arith.constant 0 : index
    %c0_45 = arith.constant 0 : index
    %142 = vector.load %arg7[%c0_44, %c0_45] : memref<16x32xf32, #tpu.memory_space<vmem>>, vector<16x32xf32>
    tpu.vector_store %arg7[%c0_44, %c0_45], %141 {strides = array<i32>} : memref<16x32xf32, #tpu.memory_space<vmem>>, vector<16x32xf32>,
    return
  }
  func.func @transform_0(%arg0: i32) -> (i32, i32) {
    %c0_i32 = arith.constant 0 : i32
    %c0_i32_0 = arith.constant 0 : i32
    return %arg0, %c0_i32 : i32, i32
  }
  func.func @transform_1(%arg0: i32) -> (i32, i32, i32) {
    %c0_i32 = arith.constant 0 : i32
    %c0_i32_0 = arith.constant 0 : i32
    %c0_i32_1 = arith.constant 0 : i32
    return %arg0, %c0_i32, %c0_i32_0 : i32, i32, i32
  }
  func.func @transform_2(%arg0: i32) -> (i32, i32) {
    %c0_i32 = arith.constant 0 : i32
    %c0_i32_0 = arith.constant 0 : i32
    %c0_i32_1 = arith.constant 0 : i32
    return %c0_i32, %c0_i32_0 : i32, i32
  }
  func.func @transform_3(%arg0: i32) -> (i32, i32) {
    %c0_i32 = arith.constant 0 : i32
    %c0_i32_0 = arith.constant 0 : i32
    %c0_i32_1 = arith.constant 0 : i32
    return %c0_i32, %c0_i32_0 : i32, i32
  }
  func.func @transform_4(%arg0: i32) -> (i32, i32) {
    %c0_i32 = arith.constant 0 : i32
    %c0_i32_0 = arith.constant 0 : i32
    %c0_i32_1 = arith.constant 0 : i32
    return %c0_i32, %c0_i32_0 : i32, i32
  }
  func.func @transform_5(%arg0: i32) -> (i32, i32) {
    %c0_i32 = arith.constant 0 : i32
    %c0_i32_0 = arith.constant 0 : i32
    %c0_i32_1 = arith.constant 0 : i32
    return %c0_i32, %c0_i32_0 : i32, i32
  }
  func.func @transform_6(%arg0: i32) -> (i32, i32) {
    %c0_i32 = arith.constant 0 : i32
    %c0_i32_0 = arith.constant 0 : i32
    return %arg0, %c0_i32 : i32, i32
  }
}

</mosaic_0001>

<bundles_post_ra>
// kernel: tpu_custom_call.1
= control target key start
LH: loop header
LB: loop body
LE: loop exit
PB: predicated region body
PF: predicated region fallthrough
CT: control target
= control target key end

     0   :  { %11 = vsyncpa [#allocation3], 0  ;;  %s2157_s0 = inlined_call_operand.vmem [shape: f32[32,32], index: 0, kind: input, shape index: {}]   ;;  %s2158_s1 = inlined_call_operand.vmem [shape: f32[2,16,16], index: 1, kind: input, shape index: {}]   ;;  %s2159_s2 = inlined_call_operand.vmem [shape: bf16[32,896], index: 2, kind: input, shape index: {}]   ;;  %s2160_s3 = inlined_call_operand.vmem [shape: bf16[384,32], index: 3, kind: input, shape index: {}]   ;;  %s2161_s4 = inlined_call_operand.vmem [shape: f32[8,896], index: 4, kind: input, shape index: {}]   ;;  %s2162_s5 = inlined_call_operand.vmem [shape: f32[16,16], index: 5, kind: input, shape index: {}]   ;;  %s2163_s6 = inlined_call_operand.hbm [shape: f32[32,32], index: 6, kind: output, shape index: {}]  }
   0x1   :  { %13 = vsyncpa [#allocation3 + $0x1], 0  ;;  %s1783_s21 = smov 0   ;;  %s1785_s22 = smov 0  }
   0x2   :  { %s1787_s23 = smov 0   ;;  %s1789_s24 = smov 0  }
   0x3 LB: > { %s1804_s25 = sadd.s32 4294967295, %s1740_s24   ;;  %s1364_s26 = sadd.s32 4294967294, %s1740_s24   ;;  %s1740_s24 = sphi %s1789_s24, %s2169_s24   ;;  %s1736_s23 = sphi %s1787_s23, %s2168_s23   ;;  %s1732_s22 = sphi %s1785_s22, %s2167_s22   ;;  %s1728_s21 = sphi %s1783_s21, %s2166_s21  }
   0x4   : > { %s1808_s27 = sadd.s32 1, %s1740_s24   ;;  %s162_s28 = sadd.s32 1, %s1736_s23 }
   0x5   : > { %s159_s29 = ssub.s32 %s1740_s24, %s1808_s27  ;;  %p172_p0 = scmp.ne.s32.totalorder %s1736_s23, %s1732_s22 }
   0x6   : > { %p160_p1 = scmp.eq.s32.totalorder %s159_s29, 0  ;;  %p173_p2 = scmp.eq.s32.totalorder %s1804_s25, 1 }
   0x7   : > { %p178_p3 = scmp.ne.s32.totalorder %s1732_s22, %s1728_s21  ;;  %p179_p4 = scmp.eq.s32.totalorder %s1364_s26, 1 }
   0x8   : > { %s1819_s30 = scalar_select %p160_p1, %s1736_s23, %s162_s28  }
   0x9   : > { %p1821_p5 = por %p173_p2, %p172_p0  ;;  %p1825_p6 = por %p179_p4, %p178_p3 }
   0xa   : > { %p1367_p7 = scmp.ge.s32.totalorder %s1740_s24, 1  ;;  %p226_p8 = scmp.lt.s32.totalorder %s1740_s24, 3 }
   0xc   : > { %p227_p9 = pnand %p1367_p7, %p226_p8 }
   0xd   : > { %s1369_s9 = sshll.u32 (!%p227_p9), %s1804_s25, 1  ;;  %vm353_vm0 = vcmask (!%p227_p9), 261120   ;;  %v1598_v14 = vld [vmem:[%s2159_s2 + $0x4] ss:$28 sps:$4 sm:$0xff] (!%p227_p9)   ;;  %v1601_v16 = vld [vmem:[%s2159_s2 + $0x3c] ss:$28 sps:$4 sm:$0xff] (!%p227_p9)   ;;  %v389_v26 = vlaneseq (!%p227_p9) }
   0xe   : > { %230 = sbr.rel (%p227_p9) target bundleno = 2373 (0x945), region = 44  ;;  %p262_p10 = scmp.lt.s32.totalorder (!%p227_p9), %s1369_s9, 3  ;;  %v1600_v15 = vld [vmem:[%s2159_s2] ss:$28 sps:$4 sm:$0xff] (!%p227_p9)   ;;  %495 = vmatprep.subr.bf16.mxu1 (!%p227_p9), %v1598_v14  ;;  %v1742_v17 = vmov (!%p227_p9), 0   ;;  %v1743_v59 = vmov (!%p227_p9), 0.0  }
   0xf   : > { %527 = vmatprep.mubr.bf16.mxu1 (!%p227_p9), %v1742_v17  ;;  %496 = vmatpush1.bf16.msra.mxu1 (!%p227_p9), %v1600_v15  ;;  %v1603_v18 = vld [vmem:[%s2159_s2 + $0x38] ss:$28 sps:$4 sm:$0xff] (!%p227_p9)   ;;  %v1606_v19 = vld [vmem:[%s2159_s2 + $0xc] ss:$28 sps:$4 sm:$0xff] (!%p227_p9)   ;;  %v1862_v33 = vshrl.u32 (!%p227_p9), %v389_v26, 7  ;;  %v1868_v39 = vld [vmem:[%s2161_s4] sm:$0xff] (!%p227_p9) }
  0x10   : > { %497 = vmatprep.subr.bf16.mxu1 (!%p227_p9), %v1601_v16  ;;  %v1604_v51 = vld [vmem:[%s2159_s2 + $0x8] ss:$28 sps:$4 sm:$0xff] (!%p227_p9)   ;;  %v1607_v54 = vld [vmem:[%s2159_s2 + $0x40] ss:$28 sps:$4 sm:$0xff] (!%p227_p9)   ;;  %v1612_v55 = vld [vmem:[%s2159_s2 + $0x14] ss:$28 sps:$4 sm:$0xff] (!%p227_p9)   ;;  %1468 = vmatprep.subr.bf16.mxu0 (!%p227_p9), %v1743_v59 }
  0x11   : > { %v391_v38 = vsub.s32 (!%p227_p9), 1, %v1862_v33  ;;  %v403_v41 = vsub.s32 (!%p227_p9), 2, %v1862_v33  ;;  %v1609_v53 = vld [vmem:[%s2159_s2 + $0x44] ss:$28 sps:$4 sm:$0xff] (!%p227_p9)   ;;  %v1610_v56 = vld [vmem:[%s2159_s2 + $0x10] ss:$28 sps:$4 sm:$0xff] (!%p227_p9)  }
  0x12   : > { %v1615_v57 = vld [vmem:[%s2159_s2 + $0x4c] ss:$28 sps:$4 sm:$0xff] (!%p227_p9)   ;;  %vm1744_vm5 = vmmov (!%p227_p9), 0   ;;  %v1904_v60 = vsub.s32 (!%p227_p9), 0, %v1862_v33  ;;  %p267_p11 = scmp.lt.s32.totalorder (!%p227_p9), %s1804_s25, 1  ;;  %vm673_vm7 = vcmask (!%p227_p9), 130048  }
  0x13   : > { %498 = vmatpush1.bf16.msra.mxu1 (!%p227_p9), %v1603_v18  ;;  %v392_v40 = vrot.slane (!%p227_p9), %v1868_v39, %v391_v38  ;;  %v404_v46 = vrot.slane (!%p227_p9), %v1868_v39, %v403_v41  ;;  %v1613_v58 = vld [vmem:[%s2159_s2 + $0x48] ss:$28 sps:$4 sm:$0xff] (!%p227_p9)   ;;  %1470 = vmatprep.mubr.msk.bf16.mxu0 (!%p227_p9), %vm1744_vm5, %v1743_v59  ;;  %s258_s29 = sand.u32 (!%p227_p9), 1, %s1732_s22   ;;  %s1423_s12 = sshll.u32 (!%p227_p9), %s1804_s25, 8 }
  0x14   : > { %538 = vmatprep.subr.bf16.mxu1 (!%p227_p9), %v1606_v19  ;;  %v277_v61 = vld [vmem:[%s2161_s4 + $0x8] sm:$0xff] (!%p227_p9)  ;;  %v411_v62 = vrot.slane (!%p227_p9), %v1868_v39, %v1904_v60  ;;  %s2109_s15 = scalar_lea.hbm (!%p227_p9), %s2163_s6, %s1423_s12  ;;  %s1745_s17 = smov (!%p227_p9), [#allocation2]  }
  0x15   : > { %s2171_s9 = smov (!%p262_p10, %s1369_s9), 3  ;;  %v281_v26 = vld [vmem:[%s2161_s4 + $0x28] sm:$0xff]  ;;  %s1682_s18 = sshll.u32 %s1745_s17, 4  ;;  %s1683_s18 = int_to_ptr.vmem [resolvable:$false] %s1682_s18 }
  0x16   : > { %s1370_s10 = sshll.u32 %s2171_s9, 3  ;;  %s1684_s19 = scalar_lea.vmem %s1683_s18, 512 }
  0x17   : > { %s265_s13 = scalar_lea.vmem %s2157_s0, %s1370_s10 }
  0x18   : > { %v1835_v0 = vld [vmem:[%s265_s13] sm:$0xff]  ;;  %v1837_v1 = vld [vmem:[%s265_s13 + $0x8] sm:$0xff]  ;;  %s268_s20 = scalar_select %p267_p11, %s1804_s25, 1 }
  0x19   : > { %v354_v2 = vsel %vm353_vm0, %v1835_v0, 0.0  ;;  %v357_v3 = vsel %vm353_vm0, %v1837_v1, 0.0  ;;  %s2116_s25 = scalar_lea.sflag [#allocation3], %s258_s29 }
  0x1a   : > { %355 = vadd.xlane.f32.xlu0 %v354_v2  ;;  %v415_v2 = vrot.slane %v277_v61, %v1904_v60  ;;  %s1422_s26 = sshll.u32 %s268_s20, 4 }
  0x1b   : > { %s271_s9 = scalar_lea.vmem %s2158_s1, %s1422_s26 }
  0x1e   : > { %358 = vadd.xlane.f32.xlu0 %v357_v3 }
  0xa7   : > { %v356_v4 = vpop.xlane.xlu0 %355 }
  0xa8   : > { %v361_v5 = vmul.f32 0.03125, %v356_v4 }
  0xaa   : > { %v363_v6 = vsub.f32 %v1835_v0, %v361_v5 }
  0xab   : > { %v359_v7 = vpop.xlane.xlu0 %358 }
  0xac   : > { %v362_v8 = vmul.f32 0.03125, %v359_v7  ;;  %v365_v9 = vmul.f32 %v363_v6, %v363_v6  ;;  %v393_v43 = vmul.f32 %v392_v40, %v363_v6 }
  0xae   : > { %v364_v10 = vsub.f32 %v1837_v1, %v362_v8  ;;  %v367_v11 = vsel %vm353_vm0, %v365_v9, 0.0 }
  0xaf   : > { %368 = vadd.xlane.f32.xlu1 %v367_v11 }
  0xb0   : > { %v366_v12 = vmul.f32 %v364_v10, %v364_v10  ;;  %v394_v44 = vmul.f32 %v392_v40, %v364_v10  ;;  %v278_v10 = vld [vmem:[%s2161_s4 + $0x10] sm:$0xff] }
  0xb1   : > { %v419_v14 = vrot.slane %v278_v10, %v1904_v60 }
  0xb2   : > { %v370_v13 = vsel %vm353_vm0, %v366_v12, 0.0  ;;  %v279_v12 = vld [vmem:[%s2161_s4 + $0x18] sm:$0xff] }
  0xb3   : > { %371 = vadd.xlane.f32.xlu1 %v370_v13  ;;  %v423_v16 = vrot.slane %v279_v12, %v1904_v60 }
 0x13c   : > { %v369_v20 = vpop.xlane.xlu1 %368 }
 0x13d   : > { %v373_v21 = vmul.f32 0.032258064, %v369_v20 }
 0x13f   : > { %1642 = vrsqrt.f32 %v373_v21  ;;  %vm377_vm1 = vcmp.eq.f32.partialorder %v373_v21, inf  ;;  %v380_v27 = vand.u32 2147483648, %v373_v21  ;;  %vm379_vm2 = vcmp.eq.f32.partialorder %v373_v21, 0.0 }
 0x140   : > { %v372_v22 = vpop.xlane.xlu1 %371 }
 0x141   : > { %v374_v23 = vmul.f32 0.032258064, %v372_v22 }
 0x143   : > { %1644 = vrsqrt.f32 %v374_v23  ;;  %vm384_vm3 = vcmp.eq.f32.partialorder %v374_v23, inf  ;;  %v387_v34 = vand.u32 2147483648, %v374_v23  ;;  %vm386_vm4 = vcmp.eq.f32.partialorder %v374_v23, 0.0 }
 0x149   : > { %v1643_v24 = vpop.eup %1642 }
 0x14a   : > { %v376_v25 = vmul.f32 %v1643_v24, %v373_v21  ;;  %v280_v24 = vld [vmem:[%s2161_s4 + $0x20] sm:$0xff] }
 0x14c   : > { %v378_v28 = vsel %vm377_vm1, %v373_v21, %v376_v25 }
 0x14d   : > { %v1645_v29 = vpop.eup %1644  ;;  %v381_v30 = vsel %vm379_vm2, %v380_v27, %v378_v28  ;;  %v427_v28 = vrot.slane %v280_v24, %v1904_v60 }
 0x14e   : > { %v395_v31 = vadd.f32 1e-06, %v381_v30  ;;  %v383_v32 = vmul.f32 %v1645_v29, %v374_v23  ;;  %v431_v30 = vrot.slane %v281_v26, %v1904_v60  ;;  %v1620_v26 = vld [vmem:[%s2160_s3 + $0x40] sm:$0xff]  }
 0x150   : > { %1646 = vrcp.f32 %v395_v31  ;;  %v385_v35 = vsel %vm384_vm3, %v374_v23, %v383_v32 }
 0x151   : > { %v388_v36 = vsel %vm386_vm4, %v387_v34, %v385_v35 }
 0x152   : > { %v396_v37 = vadd.f32 1e-06, %v388_v36 }
 0x154   : > { %1648 = vrcp.f32 %v396_v37 }
 0x15a   : > { %v1647_v42 = vpop.eup %1646 }
 0x15b   : > { %v398_v45 = vmul.f32 %v1647_v42, %v393_v43  ;;  %v285_v42 = vld [vmem:[%s271_s9] sm:$0xff]  ;;  %v286_v43 = vld [vmem:[%s271_s9 + $0x8] sm:$0xff]  ;;  %s1368_s9 = sshll.u32 %s258_s29, 4 }
 0x15c   : > { %vm287_vm6 = vcmp.eq.f32.partialorder %v285_v42, 0.0  ;;  %vm288_vm8 = vcmp.eq.f32.partialorder %v286_v43, 0.0  ;;  %s260_s10 = scalar_lea.vmem [#allocation2], %s1368_s9 }
 0x15d   : > { %v405_v49 = vadd.f32 %v404_v46, %v398_v45  ;;  %s1290_s11 = sshll.u32 %s260_s10, 4  ;;  %s2111_s11 = int_to_ptr.vmem [resolvable:$true] %s1290_s11 }
 0x15e   : > { %v1649_v47 = vpop.eup %1648  ;;  %s1678_s16 = scalar_lea.vmem %s2111_s11, 256  ;;  %p1685_p1 = scmp.lt.s32.totalorder %s2111_s11, %s1683_s18 }
 0x15f   : > { %v400_v48 = vmul.f32 %v1649_v47, %v394_v44  ;;  %p1679_p12 = scmp.ne.s32.totalorder %s2111_s11, %s1678_s16  ;;  %p1686_p2 = scmp.lt.s32.totalorder %s1684_s19, %s1678_s16 }
 0x161   : > { %v406_v50 = vadd.f32 %v404_v46, %v400_v48  ;;  %p1680_p13 = pnand %p1679_p12, %p1821_p5  ;;  %p1687_p3 = por %p1686_p2, %p1685_p1 }
 0x163   : > { %v407_v52 = vpack.c.bf16 %v406_v50, %v405_v49  ;;  %p1681_p0 = pneg %p1680_p13 }
 0x165   : > { %1385 = vmatmul.mubr.msk.bf16.vlgmr.msra.gmra.mrb[0].mxu1 %vm353_vm0, %v407_v52  ;;  %p1688_p4 = pnand %p1687_p3, %p1681_p0 }
 0x166   : > { %539 = vmatpush1.bf16.msra.mxu1 %v1604_v51  ;;  %570 = vmatprep.mubr.bf16.mxu1 %v1742_v17 }
 0x167   : > { %540 = vmatprep.subr.bf16.mxu1 %v1609_v53 }
 0x16a   : > { %541 = vmatpush1.bf16.msra.mxu1 %v1607_v54 }
 0x16b   : > { %581 = vmatprep.subr.bf16.mxu1 %v1612_v55 }
 0x16d   : > { %1386 = vmatmul.mubr.msk.bf16.vlgmr.msra.gmra.mrb[4].mxu1 %vm353_vm0, %v407_v52 }
 0x16e   : > { %582 = vmatpush1.bf16.msra.mxu1 %v1610_v56  ;;  %613 = vmatprep.mubr.bf16.mxu1 %v1742_v17 }
 0x16f   : > { %583 = vmatprep.subr.bf16.mxu1 %v1615_v57 }
 0x172   : > { %584 = vmatpush1.bf16.msra.mxu1 %v1613_v58 }
 0x173   : > { %1462 = vmatprep.subr.bf16.mxu1 %v1743_v59 }
 0x175   : > { %1387 = vmatmul.mubr.msk.bf16.vlgmr.msra.gmra.mrb[8].mxu1 %vm353_vm0, %v407_v52 }
 0x176   : > { %1464 = vmatprep.mubr.msk.bf16.mxu1 %vm1744_vm5, %v1743_v59 }
 0x238   : > { %v529_v63 = vpop.f32.mrb[0].mxu1 }
 0x239   : > { %v531_v3 = vpop.f32.mrb[1].mxu1  ;;  %v530_v5 = vadd.f32 %v529_v63, %v411_v62 }
 0x23a   : > { %v533_v4 = vpop.f32.mrb[2].mxu1  ;;  %v532_v8 = vadd.f32 %v531_v3, %v415_v2 }
 0x23b   : > { %v534_v6 = vadd.f32 %v533_v4, %v411_v62  ;;  %v535_v7 = vpop.f32.mrb[3].mxu1 }
 0x23c   : > { %v536_v9 = vadd.f32 %v535_v7, %v415_v2 }
 0x23d   : > { %v624_v11 = vpack.c.bf16 %v534_v6, %v530_v5  ;;  %v283_v6 = vld [vmem:[%s2162_s5] sm:$0xff] }
 0x23e   : > { %v625_v13 = vpack.c.bf16 %v536_v9, %v532_v8  ;;  %v284_v9 = vld [vmem:[%s2162_s5 + $0x8] sm:$0xff] }
 0x240   : > { %v572_v15 = vpop.f32.mrb[4].mxu1  ;;  %1463 = vmatpush3.bf16.xpose.msra.mxu1 %v625_v13 }
 0x241   : > { %v574_v17 = vpop.f32.mrb[5].mxu1  ;;  %1474 = vmatprep.subr.bf16.mxu1 %v1743_v59  ;;  %v573_v19 = vadd.f32 %v572_v15, %v419_v14 }
 0x242   : > { %v576_v18 = vpop.f32.mrb[6].mxu1  ;;  %v575_v22 = vadd.f32 %v574_v17, %v423_v16 }
 0x243   : > { %v577_v20 = vadd.f32 %v576_v18, %v419_v14  ;;  %v578_v21 = vpop.f32.mrb[7].mxu1 }
 0x244   : > { %v579_v23 = vadd.f32 %v578_v21, %v423_v16 }
 0x245   : > { %v626_v25 = vpack.c.bf16 %v577_v20, %v573_v19 }
 0x246   : > { %v627_v27 = vpack.c.bf16 %v579_v23, %v575_v22 }
 0x247   : > { %1465 = vmatmul.mubr.bf16.vlgmr.msra.gmra.mrb[12].mxu1 %v624_v11  ;;  %1469 = vmatpush3.bf16.msra.mxu0 %v626_v25 }
 0x248   : > { %v615_v29 = vpop.f32.mrb[8].mxu1  ;;  %1476 = vmatprep.mubr.msk.bf16.mxu1 %vm1744_vm5, %v1743_v59  ;;  %1480 = vmatprep.subr.bf16.mxu0 %v1743_v59 }
 0x249   : > { %v617_v31 = vpop.f32.mrb[9].mxu1  ;;  %v616_v34 = vadd.f32 %v615_v29, %v427_v28 }
 0x24a   : > { %v619_v32 = vpop.f32.mrb[10].mxu1  ;;  %v1932_v37 = vadd.f32 %v617_v31, %v431_v30 }
 0x24b   : > { %v620_v35 = vadd.f32 %v619_v32, %v427_v28  ;;  %v621_v36 = vpop.f32.mrb[11].mxu1  ;;  %v1624_v28 = vld [vmem:[%s2160_s3 + $0x50] sm:$0xff]  }
 0x24c   : > { %v1934_v38 = vadd.f32 %v621_v36, %v431_v30 }
 0x24d   : > { %v628_v40 = vpack.c.bf16 %v620_v35, %v616_v34 }
 0x24e   : > { %v629_v41 = vpack.c.bf16 %v1934_v38, %v1932_v37  ;;  %v1617_v37 = vld [vmem:[%s2160_s3 + $0x8] sm:$0xff]   ;;  %v1618_v38 = vld [vmem:[%s2160_s3 + $0x10] sm:$0xff]  }
 0x24f   : > { %1475 = vmatpush3.bf16.xpose.msra.mxu1 %v628_v40 }
 0x250   : > { %1486 = vmatprep.subr.bf16.mxu1 %v1743_v59 }
 0x256   : > { %1477 = vmatmul.mubr.bf16.vlgmr.msra.gmra.mrb[16].mxu1 %v627_v27  ;;  %v1622_v27 = vld [vmem:[%s2160_s3 + $0x48] sm:$0xff]  }
 0x257   : > { %1502 = vmatprep.mubr.msk.bf16.mxu1 %vm1744_vm5, %v1743_v59  ;;  %1487 = vmatpush3.bf16.msra.mxu1 %v1620_v26 }
 0x258   : > { %1488 = vmatprep.subr.bf16.mxu1 %v1743_v59 }
 0x25b   : > { %1489 = vmatpush3.bf16.msra.mxu1 %v1622_v27 }
 0x25c   : > { %1490 = vmatprep.subr.bf16.mxu1 %v1743_v59 }
 0x25f   : > { %1491 = vmatpush3.bf16.msra.mxu1 %v1624_v28 }
 0x260   : > { %1492 = vmatprep.subr.bf16.mxu1 %v1743_v59 }
 0x31a   : > { %v664_v44 = vpop.f32.mrb[12].mxu1 }
 0x31b   : > { %v671_v45 = vsel %vm287_vm6, -1e+09, %v664_v44  ;;  %v1466_v46 = vpop.f32.mrb[13].mxu1 }
 0x31c   : > { %v667_v47 = vpop.f32.mrb[14].mxu1  ;;  %v674_v48 = vsel %vm673_vm7, %v671_v45, -inf }
 0x31d   : > { %v672_v49 = vsel %vm288_vm8, -1e+09, %v667_v47  ;;  %675 = vmax.xlane.f32.xlu0 %v674_v48  ;;  %v1467_v50 = vpop.f32.mrb[15].mxu1 }
 0x31e   : > { %v677_v51 = vsel %vm673_vm7, %v672_v49, -inf }
 0x31f   : > { %678 = vmax.xlane.f32.xlu1 %v677_v51  ;;  %v1616_v51 = vld [vmem:[%s2160_s3] sm:$0xff]  }
 0x329   : > { %v780_v52 = vpop.f32.mrb[16].mxu1 }
 0x32a   : > { %v787_v53 = vsel %vm287_vm6, -1e+09, %v780_v52  ;;  %v1478_v54 = vpop.f32.mrb[17].mxu1 }
 0x32b   : > { %v783_v55 = vpop.f32.mrb[18].mxu1  ;;  %v789_v56 = vsel %vm673_vm7, %v787_v53, -inf  ;;  %v1623_v54 = vld [vmem:[%s2160_s3 + $0x28] sm:$0xff]  }
 0x32c   : > { %v788_v57 = vsel %vm288_vm8, -1e+09, %v783_v55  ;;  %790 = vmax.xlane.f32.xlu0 %v789_v56  ;;  %v1479_v58 = vpop.f32.mrb[19].mxu1  ;;  %v1625_v55 = vld [vmem:[%s2160_s3 + $0x30] sm:$0xff]   ;;  %v1626_v56 = vld [vmem:[%s2160_s3 + $0x58] sm:$0xff]  }
 0x32d   : > { %v792_v61 = vsel %vm673_vm7, %v788_v57, -inf  ;;  %1493 = vmatpush3.bf16.msra.mxu1 %v1626_v56  ;;  %v1628_v58 = vld [vmem:[%s2160_s3 + $0x60] sm:$0xff]  }
 0x32e   : > { %793 = vmax.xlane.f32.xlu1 %v792_v61  ;;  %1494 = vmatprep.subr.bf16.mxu1 %v1743_v59  ;;  %v1629_v61 = vld [vmem:[%s2160_s3 + $0x68] sm:$0xff]  }
 0x331   : > { %1495 = vmatpush3.bf16.msra.mxu1 %v1628_v58  ;;  %v1083_v58 = vsub.s32 3, %v1862_v33 }
 0x332   : > { %1496 = vmatprep.subr.bf16.mxu1 %v1743_v59 }
 0x335   : > { %1497 = vmatpush3.bf16.msra.mxu1 %v1629_v61  ;;  %v1084_v61 = vrot.slane %v1868_v39, %v1083_v58 }
 0x336   : > { %1498 = vmatprep.subr.bf16.mxu1 %v1743_v59 }
 0x3aa   : > { %v676_v62 = vpop.xlane.xlu0 %675 }
 0x3ab   : > { %v680_v63 = vsub.f32 %v671_v45, %v676_v62  ;;  %v1630_v62 = vld [vmem:[%s2160_s3 + $0x70] sm:$0xff]  }
 0x3ac   : > { %v679_v2 = vpop.xlane.xlu1 %678  ;;  %1499 = vmatpush3.bf16.msra.mxu1 %v1630_v62  ;;  %v1095_v62 = vsub.s32 4, %v1862_v33 }
 0x3ad   : > { %v682_v3 = vmul.f32 1.442695, %v680_v63  ;;  %v681_v4 = vsub.f32 %v672_v49, %v679_v2  ;;  %1500 = vmatprep.subr.bf16.mxu1 %v1743_v59  ;;  %v1631_v63 = vld [vmem:[%s2160_s3 + $0x78] sm:$0xff]  }
 0x3af   : > { %1650 = vpow2.f32 %v682_v3  ;;  %v684_v5 = vmul.f32 1.442695, %v681_v4 }
 0x3b0   : > { %1501 = vmatpush3.bf16.msra.mxu1 %v1631_v63 }
 0x3b1   : > { %1652 = vpow2.f32 %v684_v5  ;;  %1526 = vmatprep.subr.bf16.mxu1 %v1743_v59 }
 0x3b9   : > { %v1651_v7 = vpop.eup %1650  ;;  %v791_v8 = vpop.xlane.xlu0 %790 }
 0x3ba   : > { %v795_v10 = vsub.f32 %v787_v53, %v791_v8  ;;  %v686_v11 = vadd.f32 %v1651_v7, %v283_v6  ;;  %v1621_v53 = vld [vmem:[%s2160_s3 + $0x20] sm:$0xff]  }
 0x3bb   : > { %v1653_v12 = vpop.eup %1652  ;;  %v794_v13 = vpop.xlane.xlu1 %793 }
 0x3bc   : > { %v797_v14 = vmul.f32 1.442695, %v795_v10  ;;  %v796_v15 = vsub.f32 %v788_v57, %v794_v13  ;;  %v688_v16 = vsel %vm673_vm7, %v686_v11, 0.0  ;;  %v687_v17 = vadd.f32 %v1653_v12, %v284_v9  ;;  %v1627_v57 = vld [vmem:[%s2160_s3 + $0x38] sm:$0xff]  }
 0x3bd   : > { %689 = vadd.xlane.f32.xlu0 %v688_v16  ;;  %v1043_v16 = vsub.s32 5, %v1862_v33 }
 0x3be   : > { %1654 = vpow2.f32 %v797_v14  ;;  %v799_v18 = vmul.f32 1.442695, %v796_v15  ;;  %v691_v19 = vsel %vm673_vm7, %v687_v17, 0.0 }
 0x3bf   : > { %692 = vadd.xlane.f32.xlu1 %v691_v19  ;;  %v1044_v19 = vrot.slane %v1868_v39, %v1043_v16  ;;  %v1639_v16 = vld [vmem:[%s2160_s3 + $0xa8] sm:$0xff]  }
 0x3c0   : > { %1656 = vpow2.f32 %v799_v18 }
 0x3c8   : > { %v1655_v20 = vpop.eup %1654 }
 0x3c9   : > { %v801_v21 = vadd.f32 %v1655_v20, %v283_v6 }
 0x3ca   : > { %v1657_v22 = vpop.eup %1656 }
 0x3cb   : > { %v803_v23 = vsel %vm673_vm7, %v801_v21, 0.0  ;;  %v802_v24 = vadd.f32 %v1657_v22, %v284_v9 }
 0x3cc   : > { %804 = vadd.xlane.f32.xlu0 %v803_v23 }
 0x3cd   : > { %v806_v25 = vsel %vm673_vm7, %v802_v24, 0.0 }
 0x3ce   : > { %807 = vadd.xlane.f32.xlu1 %v806_v25 }
 0x44a   : > { %v690_v29 = vpop.xlane.xlu0 %689 }
 0x44b   : > { %v694_v30 = vadd.f32 1e-09, %v690_v29 }
 0x44c   : > { %v693_v31 = vpop.xlane.xlu1 %692 }
 0x44d   : > { %1658 = vrcp.f32 %v694_v30  ;;  %v695_v32 = vadd.f32 1e-09, %v693_v31 }
 0x44f   : > { %1660 = vrcp.f32 %v695_v32 }
 0x457   : > { %v1659_v34 = vpop.eup %1658 }
 0x458   : > { %v698_v42 = vmul.f32 %v1659_v34, %v686_v11 }
 0x459   : > { %v1661_v35 = vpop.eup %1660  ;;  %v805_v36 = vpop.xlane.xlu0 %804 }
 0x45a   : > { %v809_v40 = vadd.f32 1e-09, %v805_v36  ;;  %v699_v43 = vmul.f32 %v1661_v35, %v687_v17 }
 0x45b   : > { %v808_v44 = vpop.xlane.xlu1 %807 }
 0x45c   : > { %1662 = vrcp.f32 %v809_v40  ;;  %v810_v45 = vadd.f32 1e-09, %v808_v44  ;;  %v700_v46 = vpack.c.bf16 %v699_v43, %v698_v42  ;;  %v1632_v43 = vld [vmem:[%s2159_s2 + $0x18] ss:$28 sps:$4 sm:$0xff]   ;;  %v1633_v44 = vld [vmem:[%s2159_s2 + $0x50] ss:$28 sps:$4 sm:$0xff]  }
 0x45e   : > { %1664 = vrcp.f32 %v810_v45  ;;  %1471 = vmatmul.mubr.msk.bf16.vlgmr.msra.gmra.mrb[0].mxu0 %vm673_vm7, %v700_v46 }
 0x45f   : > { %1481 = vmatpush3.bf16.msra.mxu0 %v629_v41  ;;  %1482 = vmatprep.mubr.msk.bf16.mxu0 %vm1744_vm5, %v1743_v59  ;;  %v1619_v41 = vld [vmem:[%s2160_s3 + $0x18] sm:$0xff]  }
 0x460   : > { %1506 = vmatprep.subr.bf16.mxu0 %v1743_v59 }
 0x466   : > { %v1663_v47 = vpop.eup %1662 }
 0x467   : > { %v813_v49 = vmul.f32 %v1663_v47, %v801_v21 }
 0x468   : > { %v1665_v48 = vpop.eup %1664 }
 0x469   : > { %v814_v50 = vmul.f32 %v1665_v48, %v802_v24 }
 0x46b   : > { %v815_v52 = vpack.c.bf16 %v814_v50, %v813_v49 }
 0x46d   : > { %1483 = vmatmul.mubr.msk.bf16.vlgmr.msra.gmra.mrb[4].mxu0 %vm673_vm7, %v815_v52 }
 0x46e   : > { %1507 = vmatpush3.bf16.msra.mxu0 %v1616_v51  ;;  %1522 = vmatprep.mubr.msk.bf16.mxu0 %vm1744_vm5, %v1743_v59 }
 0x46f   : > { %1508 = vmatprep.subr.bf16.mxu0 %v1743_v59 }
 0x472   : > { %1509 = vmatpush3.bf16.msra.mxu0 %v1617_v37 }
 0x473   : > { %1510 = vmatprep.subr.bf16.mxu0 %v1743_v59 }
 0x476   : > { %1511 = vmatpush3.bf16.msra.mxu0 %v1618_v38 }
 0x477   : > { %1512 = vmatprep.subr.bf16.mxu0 %v1743_v59 }
 0x47a   : > { %1513 = vmatpush3.bf16.msra.mxu0 %v1619_v41 }
 0x47b   : > { %1514 = vmatprep.subr.bf16.mxu0 %v1743_v59 }
 0x47e   : > { %1515 = vmatpush3.bf16.msra.mxu0 %v1621_v53 }
 0x47f   : > { %1516 = vmatprep.subr.bf16.mxu0 %v1743_v59 }
 0x482   : > { %1517 = vmatpush3.bf16.msra.mxu0 %v1623_v54 }
 0x483   : > { %1518 = vmatprep.subr.bf16.mxu0 %v1743_v59 }
 0x486   : > { %1519 = vmatpush3.bf16.msra.mxu0 %v1625_v55 }
 0x487   : > { %1520 = vmatprep.subr.bf16.mxu0 %v1743_v59 }
 0x48a   : > { %1521 = vmatpush3.bf16.msra.mxu0 %v1627_v57 }
 0x48b   : > { %1534 = vmatprep.subr.bf16.mxu0 %v1743_v59 }
 0x531   : > { %v738_v2 = vpop.f32.mrb[0].mxu0 }
 0x532   : > { %v1472_v3 = vpop.f32.mrb[1].mxu0 }
 0x533   : > { %v741_v4 = vpop.f32.mrb[2].mxu0 }
 0x534   : > { %v745_v5 = vpack.c.bf16 %v741_v4, %v738_v2  ;;  %v1473_v6 = vpop.f32.mrb[3].mxu0 }
 0x536   : > { %1523 = vmatmul.mubr.bf16.vlgmr.msra.gmra.mrb[8].mxu0 %v745_v5  ;;  %v1096_v5 = vrot.slane %v1868_v39, %v1095_v62 }
 0x537   : > { %1550 = vmatprep.mubr.msk.bf16.mxu0 %vm1744_vm5, %v1743_v59 }
 0x540   : > { %v853_v7 = vpop.f32.mrb[4].mxu0 }
 0x541   : > { %v1484_v8 = vpop.f32.mrb[5].mxu0 }
 0x542   : > { %v856_v9 = vpop.f32.mrb[6].mxu0 }
 0x543   : > { %v860_v10 = vpack.c.bf16 %v856_v9, %v853_v7  ;;  %v1485_v11 = vpop.f32.mrb[7].mxu0 }
 0x544   : > { %v1634_v11 = vld [vmem:[%s2160_s3 + $0x80] sm:$0xff]  }
 0x545   : > { %1503 = vmatmul.mubr.bf16.vlgmr.msra.gmra.mrb[20].mxu1 %v860_v10  ;;  %1535 = vmatpush3.bf16.msra.mxu0 %v1634_v11 }
 0x546   : > { %1530 = vmatprep.mubr.msk.bf16.mxu1 %vm1744_vm5, %v1743_v59  ;;  %1527 = vmatpush3.bf16.msra.mxu1 %v1632_v43 }
 0x547   : > { %1528 = vmatprep.subr.bf16.mxu1 %v1743_v59  ;;  %1536 = vmatprep.subr.bf16.mxu0 %v1743_v59 }
 0x54a   : > { %1529 = vmatpush3.bf16.msra.mxu1 %v1633_v44 }
 0x609   : > { %v1032_v12 = vpop.f32.mrb[8].mxu0 }
 0x60a   : > { %v1524_v13 = vpop.f32.mrb[9].mxu0 }
 0x60b   : > { %v1035_v14 = vpop.f32.mrb[10].mxu0  ;;  %v1636_v13 = vld [vmem:[%s2160_s3 + $0x90] sm:$0xff]  }
 0x60c   : > { %v1525_v15 = vpop.f32.mrb[11].mxu0 }
 0x60d   : > { %v1638_v15 = vld [vmem:[%s2160_s3 + $0xa0] sm:$0xff]  }
 0x618   : > { %v943_v17 = vpop.f32.mrb[20].mxu1 }
 0x619   : > { %v1033_v18 = vadd.f32 %v1032_v12, %v943_v17  ;;  %v1504_v20 = vpop.f32.mrb[21].mxu1  ;;  %v1635_v12 = vld [vmem:[%s2160_s3 + $0x88] sm:$0xff]   ;;  %v1640_v17 = vld [vmem:[%s2160_s3 + $0xb0] sm:$0xff]  }
 0x61a   : > { %v946_v21 = vpop.f32.mrb[22].mxu1  ;;  %1537 = vmatpush3.bf16.msra.mxu0 %v1635_v12 }
 0x61b   : > { %v1039_v22 = vadd.f32 %v1033_v18, %v1835_v0  ;;  %v1036_v23 = vadd.f32 %v1035_v14, %v946_v21  ;;  %v1505_v24 = vpop.f32.mrb[23].mxu1  ;;  %1538 = vmatprep.subr.bf16.mxu0 %v1743_v59  ;;  %v1637_v14 = vld [vmem:[%s2160_s3 + $0x98] sm:$0xff]  }
 0x61c   : > { %v1641_v18 = vld [vmem:[%s2160_s3 + $0xb8] sm:$0xff]  }
 0x61d   : > { %v2041_v25 = vadd.f32 %v1044_v19, %v1039_v22  ;;  %v1040_v26 = vadd.f32 %v1036_v23, %v1837_v1 }
 0x61e   : > { %1539 = vmatpush3.bf16.msra.mxu0 %v1636_v13 }
 0x61f   : > { %v2044_v27 = vadd.f32 %v1044_v19, %v1040_v26  ;;  %v1047_v28 = vsel %vm353_vm0, %v2041_v25, 0.0  ;;  %1540 = vmatprep.subr.bf16.mxu0 %v1743_v59  ;;  %v282_v19 = vld [vmem:[%s2161_s4 + $0x30] sm:$0xff] }
 0x620   : > { %1048 = vadd.xlane.f32.xlu0 %v1047_v28  ;;  %v1103_v20 = vrot.slane %v282_v19, %v1904_v60 }
 0x621   : > { %v1050_v29 = vsel %vm353_vm0, %v2044_v27, 0.0 }
 0x622   : > { %1051 = vadd.xlane.f32.xlu1 %v1050_v29  ;;  %1541 = vmatpush3.bf16.msra.mxu0 %v1637_v14 }
 0x623   : > { %1542 = vmatprep.subr.bf16.mxu0 %v1743_v59 }
 0x626   : > { %1543 = vmatpush3.bf16.msra.mxu0 %v1638_v15 }
 0x627   : > { %1544 = vmatprep.subr.bf16.mxu0 %v1743_v59 }
 0x62a   : > { %1545 = vmatpush3.bf16.msra.mxu0 %v1639_v16 }
 0x62b   : > { %1546 = vmatprep.subr.bf16.mxu0 %v1743_v59 }
 0x62e   : > { %1547 = vmatpush3.bf16.msra.mxu0 %v1640_v17 }
 0x62f   : > { %1548 = vmatprep.subr.bf16.mxu0 %v1743_v59 }
 0x632   : > { %1549 = vmatpush3.bf16.msra.mxu0 %v1641_v18 }
 0x6ad   : > { %v1049_v30 = vpop.xlane.xlu0 %1048 }
 0x6ae   : > { %v1053_v31 = vmul.f32 0.03125, %v1049_v30 }
 0x6af   : > { %v1052_v32 = vpop.xlane.xlu1 %1051 }
 0x6b0   : > { %v1055_v0 = vsub.f32 %v2041_v25, %v1053_v31  ;;  %v1054_v34 = vmul.f32 0.03125, %v1052_v32 }
 0x6b2   : > { %v1056_v35 = vsub.f32 %v2044_v27, %v1054_v34  ;;  %v1057_v36 = vmul.f32 %v1055_v0, %v1055_v0  ;;  %v1085_v2 = vmul.f32 %v1084_v61, %v1055_v0 }
 0x6b4   : > { %v1059_v1 = vsel %vm353_vm0, %v1057_v36, 0.0  ;;  %v1058_v40 = vmul.f32 %v1056_v35, %v1056_v35  ;;  %v1086_v3 = vmul.f32 %v1084_v61, %v1056_v35 }
 0x6b5   : > { %1060 = vadd.xlane.f32.xlu0 %v1059_v1 }
 0x6b6   : > { %v1062_v42 = vsel %vm353_vm0, %v1058_v40, 0.0 }
 0x6b7   : > { %1063 = vadd.xlane.f32.xlu1 %v1062_v42 }
 0x742   : > { %v1061_v45 = vpop.xlane.xlu0 %1060 }
 0x743   : > { %v1065_v46 = vmul.f32 0.032258064, %v1061_v45 }
 0x744   : > { %v1064_v47 = vpop.xlane.xlu1 %1063 }
 0x745   : > { %1666 = vrsqrt.f32 %v1065_v46  ;;  %v1066_v48 = vmul.f32 0.032258064, %v1064_v47  ;;  %vm1069_vm9 = vcmp.eq.f32.partialorder %v1065_v46, inf  ;;  %v1072_v51 = vand.u32 2147483648, %v1065_v46 }
 0x746   : > { %vm1071_vm10 = vcmp.eq.f32.partialorder %v1065_v46, 0.0 }
 0x747   : > { %1668 = vrsqrt.f32 %v1066_v48  ;;  %vm1076_vm11 = vcmp.eq.f32.partialorder %v1066_v48, inf  ;;  %v1079_v54 = vand.u32 2147483648, %v1066_v48  ;;  %vm1078_vm12 = vcmp.eq.f32.partialorder %v1066_v48, 0.0 }
 0x74f   : > { %v1667_v49 = vpop.eup %1666 }
 0x750   : > { %v1068_v50 = vmul.f32 %v1667_v49, %v1065_v46  ;;  %v1181_v49 = vsub.s32 6, %v1862_v33 }
 0x751   : > { %v1669_v52 = vpop.eup %1668 }
 0x752   : > { %v1070_v37 = vsel %vm1069_vm9, %v1065_v46, %v1068_v50  ;;  %v1075_v41 = vmul.f32 %v1669_v52, %v1066_v48  ;;  %v1182_v50 = vrot.slane %v1868_v39, %v1181_v49 }
 0x753   : > { %v1073_v38 = vsel %vm1071_vm10, %v1072_v51, %v1070_v37 }
 0x754   : > { %v1087_v53 = vadd.f32 1e-06, %v1073_v38  ;;  %v1077_v55 = vsel %vm1076_vm11, %v1066_v48, %v1075_v41 }
 0x755   : > { %v1080_v56 = vsel %vm1078_vm12, %v1079_v54, %v1077_v55 }
 0x756   : > { %1670 = vrcp.f32 %v1087_v53  ;;  %v1088_v57 = vadd.f32 1e-06, %v1080_v56 }
 0x758   : > { %1672 = vrcp.f32 %v1088_v57 }
 0x760   : > { %v1671_v63 = vpop.eup %1670 }
 0x761   : > { %v1090_v4 = vmul.f32 %v1671_v63, %v1085_v2 }
 0x762   : > { %v1673_v6 = vpop.eup %1672 }
 0x763   : > { %v1092_v7 = vmul.f32 %v1673_v6, %v1086_v3  ;;  %v1097_v8 = vadd.f32 %v1096_v5, %v1090_v4 }
 0x765   : > { %v1098_v9 = vadd.f32 %v1096_v5, %v1092_v7 }
 0x767   : > { %v1099_v10 = vpack.c.bf16 %v1098_v9, %v1097_v8 }
 0x769   : > { %1531 = vmatmul.mubr.msk.bf16.vlgmr.msra.gmra.mrb[24].mxu1 %vm353_vm0, %v1099_v10 }
 0x83c   : > { %v1153_v21 = vpop.f32.mrb[24].mxu1 }
 0x83d   : > { %v1154_v22 = vadd.f32 %v1153_v21, %v1103_v20  ;;  %v1532_v23 = vpop.f32.mrb[25].mxu1 }
 0x83e   : > { %v1156_v24 = vpop.f32.mrb[26].mxu1 }
 0x83f   : > { %v1162_v26 = vmul.f32 0.044715, %v1154_v22  ;;  %v1157_v28 = vadd.f32 %v1156_v24, %v1103_v20  ;;  %v1533_v29 = vpop.f32.mrb[27].mxu1  ;;  %v1160_v43 = vmul.f32 0.5, %v1154_v22 }
 0x841   : > { %v1164_v30 = vmul.f32 %v1162_v26, %v1154_v22  ;;  %v1163_v31 = vmul.f32 0.044715, %v1157_v28  ;;  %v1161_v44 = vmul.f32 0.5, %v1157_v28 }
 0x843   : > { %v1166_v32 = vmul.f32 %v1164_v30, %v1154_v22  ;;  %v1165_v0 = vmul.f32 %v1163_v31, %v1157_v28 }
 0x845   : > { %v1168_v34 = vadd.f32 %v1166_v32, %v1154_v22  ;;  %v1167_v59 = vmul.f32 %v1165_v0, %v1157_v28 }
 0x847   : > { %v1170_v35 = vmul.f32 0.7978846, %v1168_v34  ;;  %v1169_v36 = vadd.f32 %v1167_v59, %v1157_v28 }
 0x849   : > { %1674 = vtanh.f32 %v1170_v35  ;;  %v1171_v1 = vmul.f32 0.7978846, %v1169_v36 }
 0x84b   : > { %1676 = vtanh.f32 %v1171_v1 }
 0x853   : > { %v1675_v60 = vpop.eup %1674 }
 0x854   : > { %v1174_v40 = vadd.f32 1.0, %v1675_v60 }
 0x855   : > { %v1677_v42 = vpop.eup %1676 }
 0x856   : > { %v1175_v45 = vadd.f32 1.0, %v1677_v42  ;;  %v1176_v46 = vmul.f32 %v1174_v40, %v1160_v43 }
 0x858   : > { %v1177_v47 = vmul.f32 %v1175_v45, %v1161_v44 }
 0x85a   : > { %v1178_v48 = vpack.c.bf16 %v1177_v47, %v1176_v46 }
 0x85c   : > { %1551 = vmatmul.mubr.bf16.vlgmr.msra.gmra.mrb[12].mxu0 %v1178_v48 }
 0x92f   : > { %v1265_v51 = vpop.f32.mrb[12].mxu0 }
 0x930   : > { %v1266_v52 = vadd.f32 %v1265_v51, %v1182_v50  ;;  %v1552_v37 = vpop.f32.mrb[13].mxu0 }
 0x931   : > { %v1268_v38 = vpop.f32.mrb[14].mxu0 }
 0x932   : > { %v1272_v41 = vadd.f32 %v1266_v52, %v2041_v25  ;;  %v1269_v53 = vadd.f32 %v1268_v38, %v1182_v50  ;;  %v1553_v54 = vpop.f32.mrb[15].mxu0 }
 0x934   : > { %1274 = vst.msk [vmem:[%s260_s10] sm:$0xff] %vm353_vm0, %v1272_v41  ;;  %v1273_v33 = vadd.f32 %v1269_v53, %v2044_v27 }
 0x936   : > { %1275 = vst.msk [vmem:[%s260_s10 + $0x8] sm:$0xff] %vm353_vm0, %v1273_v33 }
 0x937   : > { %1691 = shalt.err (!%p1688_p4)
}
 0x938   : > { %s1692_s20 = scalar_lea.hbm %s2109_s15, 256  ;;  %s1696_s29 = scalar_lea.hbm %s2163_s6, 512 }
 0x939   : > { %p1693_p7 = scmp.ne.s32.totalorder %s2109_s15, %s1692_s20  ;;  %p1697_p10 = scmp.lt.u32.totalorder %s2109_s15, %s2163_s6 }
 0x93a   : > { %p1698_p11 = scmp.lt.u32.totalorder %s1696_s29, %s1692_s20  ;;  %p1700_p13 = scmp.lt.u32.totalorder %s1692_s20, %s2109_s15 }
 0x93b   : > { %p1694_p8 = pnand %p1693_p7, %p1821_p5 }
 0x93c   : > { %p1699_p12 = por %p1698_p11, %p1697_p10 }
 0x93d   : > { %p1695_p9 = pneg %p1694_p8 }
 0x93e   : > { %p1701_p0 = por %p1700_p13, %p1699_p12 }
 0x940   : > { %p1702_p1 = pnand %p1701_p0, %p1695_p9 }
 0x942   : > { %1705 = shalt.err (!%p1702_p1)
}
 0x943   : > { %s1746_s12 = smov 128   ;;  %s1747_s13 = smov 8  }
 0x944   : > { %1554 = dma.vmem_to_hbm [thread:$0]  (%p1821_p5), %s2111_s11, 256, %s2109_s15, %s2116_s25, %s1746_s12, %s1746_s12, %s1747_s13  }
 0x945 PF: > { %p1560_p2 = scmp.ge.s32.totalorder %s1740_s24, 2  ;;  %s1305_s14 = sand.u32 1, %s1728_s21  }
 0x946   : > { %s1306_s16 = scalar_lea.sflag [#allocation3], %s1305_s14 }
 0x947   : > { %p1557_p3 = pnand %p1560_p2, %p1825_p6 }
 0x949   : > { %1723 = dma.done.wait (!%p1557_p3), %s1306_s16, 256  }
 0x94a   : > { %1725 = vsyncadd (!%p1557_p3), %s1306_s16, 4294967040  ;;  %p16_p4 = scmp.ge.s32.totalorder %s1808_s27, 4   ;;  %s2166_s21 = smov %s1732_s22 }
 0x94b   : > { %s2167_s22 = smov %s1736_s23  ;;  %s2168_s23 = smov %s1819_s30 }
 0x94c   : > { %s2169_s24 = smov %s1808_s27  ;;  %18 = sbr.rel (!%p16_p4) target bundleno = 3 (0x3), region = 82 }
 0x953   :  { %1311 = vsyncpa [#allocation3], 1 }
 0x954   :  { %1313 = vsyncpa [#allocation3 + $0x1], 1 }

</bundles_post_ra>
